<compile_context>
chip_gen: v7x
topology: tpu7x:2x2x1
jax: 0.10.0
libtpu: 0.0.40
codegen_flags: <defaults>
</compile_context>

<pallas_src>
import functools

import jax
import jax.numpy as jnp
from jax.experimental import pallas as pl
from jax.experimental.pallas import tpu as pltpu


# ----------------------------- Pallas kernel ------------------------------ #
def dyrelub_kernel(x_ref, w1_ref, b1_ref, w2_ref, b2_ref, o_ref,
                   *, k, C, inv_hw, lambdas, init_v):
    """Batch-blocked DyReLU-B forward.

    x_ref : (Bt, C, HW)      input activations
    w1_ref: (C, Cr)          fc1 weight (in x out)
    b1_ref: (1, Cr)          fc1 bias
    w2_ref: (Cr, 2k*C)       fc2 weight, columns grouped per coefficient j
    b2_ref: (1, 2k*C)        fc2 bias, same column order
    o_ref : (Bt, C, HW)      output
    """
    x = x_ref[...]                                        # (Bt, C, HW)

    # Spatial mean pooling over the full (unpadded) extent.
    theta = jnp.sum(x, axis=-1) * inv_hw                  # (Bt, C)

    # fc1 + ReLU  (M = Bt rows through the MXU)
    h = jnp.dot(theta, w1_ref[...],
                preferred_element_type=jnp.float32) + b1_ref[...]
    h = jnp.maximum(h, 0.0)                               # (Bt, Cr)

    # fc2: single fused, lane-dense matmul for all 2k coefficient groups.
    t = jnp.dot(h, w2_ref[...],
                preferred_element_type=jnp.float32) + b2_ref[...]   # (Bt, 2k*C)
    s = jax.nn.sigmoid(t)                                 # EUP transcendental

    # coef_j = (2*sigmoid - 1) * lambda_j + init_v_j, constants folded.
    def coef(j):
        sl = s[:, j * C:(j + 1) * C]                      # (Bt, C)
        return sl * (2.0 * lambdas[j]) + (init_v[j] - lambdas[j])

    # Hoisted (Bt, C, 1) broadcasts; max loop live set is {x, out, cand}.
    a = [coef(j)[:, :, None] for j in range(k)]           # slopes
    b = [coef(k + j)[:, :, None] for j in range(k)]       # intercepts

    out = x * a[0] + b[0]
    for j in range(1, k):
        out = jnp.maximum(out, x * a[j] + b[j])

    o_ref[...] = out


# ------------------------------- Wrapper ----------------------------------- #
def dyrelub_forward(x, fc1_w, fc1_b, fc2_w, fc2_b, *, k=2):
    """x: (B, C, H, W) NCHW float32.  fc weights use the torch (out, in) layout."""
    B, C, H, W = x.shape
    Cr = fc1_w.shape[0]
    two_k = 2 * k
    assert fc2_w.shape == (two_k * C, Cr)

    HW = H * W

    # ----- batch tile: largest divisor of B whose tile stays ~<= 4 MiB ----- #
    slab_bytes = C * HW * 4
    tile_target = 4 * 1024 * 1024
    bt_cap = max(1, tile_target // slab_bytes)
    Bt = 1
    for d in range(1, B + 1):
        if B % d == 0 and d <= bt_cap:
            Bt = d
    grid = (B // Bt,)

    # Parameter glue (plain JAX, negligible): transpose to (in, out) and
    # reorder fc2 columns so coefficient j occupies columns [j*C, (j+1)*C).
    # reference: theta.view(-1, C, 2k)[b, c, j] == theta_flat[b, c*2k + j]
    perm = (jnp.arange(C)[None, :] * two_k
            + jnp.arange(two_k)[:, None]).reshape(-1)     # perm[j*C+c] = c*2k+j
    w1 = fc1_w.T                                          # (C, Cr)
    b1 = fc1_b.reshape(1, Cr)                             # (1, Cr)
    w2 = fc2_w.T[:, perm]                                 # (Cr, 2k*C)
    b2 = fc2_b[perm].reshape(1, two_k * C)                # (1, 2k*C)

    lambdas = tuple([1.0] * k + [0.5] * k)                # registered buffer values
    init_v = tuple([1.0] + [0.0] * (two_k - 1))           # registered buffer values

    x3 = x.reshape(B, C, HW)                              # no padding, no extra HBM pass

    kernel = functools.partial(
        dyrelub_kernel, k=k, C=C, inv_hw=1.0 / HW, lambdas=lambdas, init_v=init_v)

    # VMEM budget: in + out double-buffered tiles + resident weights + slack.
    tile_bytes = Bt * C * HW * 4
    weight_bytes = (C * Cr + Cr + Cr * two_k * C + two_k * C) * 4
    vmem_need = 4 * tile_bytes + 2 * weight_bytes + (2 << 20)
    vmem_limit = int(min(max(vmem_need, 32 << 20), 96 << 20))

    cost = pl.CostEstimate(
        flops=2 * B * C * Cr + 2 * B * Cr * two_k * C + B * C * HW * (3 * k - 1),
        transcendentals=B * two_k * C,
        bytes_accessed=2 * B * C * HW * 4 + weight_bytes,
    )

    resident = dict(pipeline_mode=pl.Buffered(1))         # constant index_map weights

    out3 = pl.pallas_call(
        kernel,
        out_shape=jax.ShapeDtypeStruct((B, C, HW), jnp.float32),
        grid=grid,
        in_specs=[
            pl.BlockSpec((Bt, C, HW), lambda b: (b, 0, 0)),            # x tile
            pl.BlockSpec((C, Cr), lambda b: (0, 0), **resident),       # w1
            pl.BlockSpec((1, Cr), lambda b: (0, 0), **resident),       # b1
            pl.BlockSpec((Cr, two_k * C), lambda b: (0, 0), **resident),   # w2
            pl.BlockSpec((1, two_k * C), lambda b: (0, 0), **resident),    # b2
        ],
        out_specs=pl.BlockSpec((Bt, C, HW), lambda b: (b, 0, 0)),
        compiler_params=pltpu.CompilerParams(
            dimension_semantics=("parallel",),
            vmem_limit_bytes=vmem_limit),
        cost_estimate=cost,
    )(x3, w1, b1, w2, b2)

    return out3.reshape(B, C, H, W)


# ---------------------------- Pure-JAX reference --------------------------- #
def dyrelub_reference(x, fc1_w, fc1_b, fc2_w, fc2_b, *, k=2):
    B, C, H, W = x.shape
    theta = jnp.mean(jnp.mean(x, axis=-1), axis=-1)          # (B, C)
    theta = jnp.maximum(theta @ fc1_w.T + fc1_b, 0.0)
    theta = theta @ fc2_w.T + fc2_b
    theta = 2.0 * jax.nn.sigmoid(theta) - 1.0
    lambdas = jnp.array([1.0] * k + [0.5] * k, jnp.float32)
    init_v = jnp.array([1.0] + [0.0] * (2 * k - 1), jnp.float32)
    coefs = theta.reshape(-1, C, 2 * k) * lambdas + init_v   # (B, C, 2k)
    x_perm = jnp.transpose(x, (2, 3, 0, 1))[..., None]       # (H, W, B, C, 1)
    out = x_perm * coefs[:, :, :k] + coefs[:, :, k:]         # (H, W, B, C, k)
    res = jnp.max(out, axis=-1)                              # (H, W, B, C)
    return jnp.transpose(res, (2, 3, 0, 1))                  # (B, C, H, W)


# ------------------------------------ Main --------------------------------- #
if __name__ == "__main__":
    B, C, H, W = 2, 8, 16, 16
    reduction, k = 4, 2
    Cr = C // reduction

    key = jax.random.PRNGKey(0)
    kx, k1w, k1b, k2w, k2b = jax.random.split(key, 5)

    x = jax.random.normal(kx, (B, C, H, W), dtype=jnp.float32)
    # Deterministic synthetic parameters (torch Linear layout: (out, in)).
    fc1_w = 0.3 * jax.random.normal(k1w, (Cr, C), dtype=jnp.float32)
    fc1_b = 0.1 * jax.random.normal(k1b, (Cr,), dtype=jnp.float32)
    fc2_w = 0.3 * jax.random.normal(k2w, (2 * k * C, Cr), dtype=jnp.float32)
    fc2_b = 0.1 * jax.random.normal(k2b, (2 * k * C,), dtype=jnp.float32)

    out = dyrelub_forward(x, fc1_w, fc1_b, fc2_w, fc2_b, k=k)
    out = jax.block_until_ready(out)

    ref = dyrelub_reference(x, fc1_w, fc1_b, fc2_w, fc2_b, k=k)
    assert out.shape == (B, C, H, W)
    assert jnp.allclose(out, ref, atol=2e-5, rtol=2e-5), (
        f"max abs err {jnp.max(jnp.abs(out - ref))}")

    print("KERNEL_OK")
</pallas_src>

<mosaic_0001>
module attributes {stable_mosaic.version = 11 : i64} {
  func.func @dyrelub_kernel(%arg0: i32, %arg1: memref<2x8x256xf32, #tpu.memory_space<vmem>>, %arg2: memref<8x2xf32, #tpu.memory_space<vmem>>, %arg3: memref<1x2xf32, #tpu.memory_space<vmem>>, %arg4: memref<2x32xf32, #tpu.memory_space<vmem>>, %arg5: memref<1x32xf32, #tpu.memory_space<vmem>>, %arg6: memref<2x8x256xf32, #tpu.memory_space<vmem>>) attributes {dimension_semantics = [#tpu.dimension_semantics<parallel>], iteration_bounds = array<i64: 1>, scalar_prefetch = 0 : i64, scratch_operands = 0 : i64, tpu.core_type = #tpu.core_type<tc>, window_params = [{transform_indices = @transform_0, window_bounds = array<i64: 2, 8, 256>}, {pipeline_mode = #tpu.pipeline_mode<synchronous>, transform_indices = @transform_1, window_bounds = array<i64: 8, 2>}, {pipeline_mode = #tpu.pipeline_mode<synchronous>, transform_indices = @transform_2, window_bounds = array<i64: 1, 2>}, {pipeline_mode = #tpu.pipeline_mode<synchronous>, transform_indices = @transform_3, window_bounds = array<i64: 2, 32>}, {pipeline_mode = #tpu.pipeline_mode<synchronous>, transform_indices = @transform_4, window_bounds = array<i64: 1, 32>}, {transform_indices = @transform_5, window_bounds = array<i64: 2, 8, 256>}]} {
    %c0 = arith.constant 0 : index
    %c0_0 = arith.constant 0 : index
    %c0_1 = arith.constant 0 : index
    %0 = vector.load %arg1[%c0, %c0_0, %c0_1] : memref<2x8x256xf32, #tpu.memory_space<vmem>>, vector<2x8x256xf32>
    %cst = arith.constant dense<0.000000e+00> : vector<2x8xf32>
    %1 = vector.multi_reduction <add>, %0, %cst [2] : vector<2x8x256xf32> to vector<2x8xf32>
    %cst_2 = arith.constant 3.906250e-03 : f32
    %2 = vector.broadcast %cst_2 : f32 to vector<2x8xf32>
    %3 = arith.mulf %1, %2 : vector<2x8xf32>
    %c0_3 = arith.constant 0 : index
    %c0_4 = arith.constant 0 : index
    %4 = vector.load %arg2[%c0_3, %c0_4] : memref<8x2xf32, #tpu.memory_space<vmem>>, vector<8x2xf32>
    %cst_5 = arith.constant dense<0.000000e+00> : vector<2x2xf32>
    %5 = tpu.matmul %3, %4, %cst_5 {dimension_numbers = #tpu.dot_dimension_numbers<[1], [0], [0], [1], [0, 0, 1, 1], [], []>} : vector<2x8xf32>, vector<8x2xf32>, vector<2x2xf32> -> vector<2x2xf32>
    %c0_6 = arith.constant 0 : index
    %c0_7 = arith.constant 0 : index
    %6 = vector.load %arg3[%c0_6, %c0_7] : memref<1x2xf32, #tpu.memory_space<vmem>>, vector<1x2xf32>
    %7 = vector.broadcast %6 : vector<1x2xf32> to vector<2x2xf32>
    %8 = arith.addf %5, %7 : vector<2x2xf32>
    %cst_8 = arith.constant 0.000000e+00 : f32
    %9 = vector.broadcast %cst_8 : f32 to vector<2x2xf32>
    %10 = arith.maximumf %8, %9 : vector<2x2xf32>
    %c0_9 = arith.constant 0 : index
    %c0_10 = arith.constant 0 : index
    %11 = vector.load %arg4[%c0_9, %c0_10] : memref<2x32xf32, #tpu.memory_space<vmem>>, vector<2x32xf32>
    %cst_11 = arith.constant dense<0.000000e+00> : vector<2x32xf32>
    %12 = tpu.matmul %10, %11, %cst_11 {dimension_numbers = #tpu.dot_dimension_numbers<[1], [0], [0], [1], [0, 0, 1, 1], [], []>} : vector<2x2xf32>, vector<2x32xf32>, vector<2x32xf32> -> vector<2x32xf32>
    %c0_12 = arith.constant 0 : index
    %c0_13 = arith.constant 0 : index
    %13 = vector.load %arg5[%c0_12, %c0_13] : memref<1x32xf32, #tpu.memory_space<vmem>>, vector<1x32xf32>
    %14 = vector.broadcast %13 : vector<1x32xf32> to vector<2x32xf32>
    %15 = arith.addf %12, %14 : vector<2x32xf32>
    %16 = arith.negf %15 : vector<2x32xf32>
    %17 = math.exp %16 : vector<2x32xf32>
    %cst_14 = arith.constant 1.000000e+00 : f32
    %18 = vector.broadcast %cst_14 : f32 to vector<2x32xf32>
    %19 = arith.addf %18, %17 : vector<2x32xf32>
    %20 = arith.divf %18, %19 : vector<2x32xf32>
    %21 = vector.extract_strided_slice %20 {offsets = [0, 0], sizes = [2, 8], strides = [1, 1]} : vector<2x32xf32> to vector<2x8xf32>
    %cst_15 = arith.constant 2.000000e+00 : f32
    %22 = vector.broadcast %cst_15 : f32 to vector<2x8xf32>
    %23 = arith.mulf %21, %22 : vector<2x8xf32>
    %cst_16 = arith.constant 0.000000e+00 : f32
    %24 = vector.broadcast %cst_16 : f32 to vector<2x8xf32>
    %25 = arith.addf %23, %24 : vector<2x8xf32>
    %26 = vector.shape_cast %25 : vector<2x8xf32> to vector<2x8x1xf32>
    %27 = vector.extract_strided_slice %20 {offsets = [0, 8], sizes = [2, 8], strides = [1, 1]} : vector<2x32xf32> to vector<2x8xf32>
    %cst_17 = arith.constant 2.000000e+00 : f32
    %28 = vector.broadcast %cst_17 : f32 to vector<2x8xf32>
    %29 = arith.mulf %27, %28 : vector<2x8xf32>
    %cst_18 = arith.constant -1.000000e+00 : f32
    %30 = vector.broadcast %cst_18 : f32 to vector<2x8xf32>
    %31 = arith.addf %29, %30 : vector<2x8xf32>
    %32 = vector.shape_cast %31 : vector<2x8xf32> to vector<2x8x1xf32>
    %33 = vector.extract_strided_slice %20 {offsets = [0, 16], sizes = [2, 8], strides = [1, 1]} : vector<2x32xf32> to vector<2x8xf32>
    %cst_19 = arith.constant 1.000000e+00 : f32
    %34 = vector.broadcast %cst_19 : f32 to vector<2x8xf32>
    %35 = arith.mulf %33, %34 : vector<2x8xf32>
    %cst_20 = arith.constant -5.000000e-01 : f32
    %36 = vector.broadcast %cst_20 : f32 to vector<2x8xf32>
    %37 = arith.addf %35, %36 : vector<2x8xf32>
    %38 = vector.shape_cast %37 : vector<2x8xf32> to vector<2x8x1xf32>
    %39 = vector.extract_strided_slice %20 {offsets = [0, 24], sizes = [2, 8], strides = [1, 1]} : vector<2x32xf32> to vector<2x8xf32>
    %cst_21 = arith.constant 1.000000e+00 : f32
    %40 = vector.broadcast %cst_21 : f32 to vector<2x8xf32>
    %41 = arith.mulf %39, %40 : vector<2x8xf32>
    %cst_22 = arith.constant -5.000000e-01 : f32
    %42 = vector.broadcast %cst_22 : f32 to vector<2x8xf32>
    %43 = arith.addf %41, %42 : vector<2x8xf32>
    %44 = vector.shape_cast %43 : vector<2x8xf32> to vector<2x8x1xf32>
    %45 = vector.broadcast %26 : vector<2x8x1xf32> to vector<2x8x256xf32>
    %46 = arith.mulf %0, %45 : vector<2x8x256xf32>
    %47 = vector.broadcast %38 : vector<2x8x1xf32> to vector<2x8x256xf32>
    %48 = arith.addf %46, %47 : vector<2x8x256xf32>
    %49 = vector.broadcast %32 : vector<2x8x1xf32> to vector<2x8x256xf32>
    %50 = arith.mulf %0, %49 : vector<2x8x256xf32>
    %51 = vector.broadcast %44 : vector<2x8x1xf32> to vector<2x8x256xf32>
    %52 = arith.addf %50, %51 : vector<2x8x256xf32>
    %53 = arith.maximumf %48, %52 : vector<2x8x256xf32>
    %c0_23 = arith.constant 0 : index
    %c0_24 = arith.constant 0 : index
    %c0_25 = arith.constant 0 : index
    %54 = vector.load %arg6[%c0_23, %c0_24, %c0_25] : memref<2x8x256xf32, #tpu.memory_space<vmem>>, vector<2x8x256xf32>
    tpu.vector_store %arg6[%c0_23, %c0_24, %c0_25], %53 {strides = array<i32>} : memref<2x8x256xf32, #tpu.memory_space<vmem>>, vector<2x8x256xf32>,
    return
  }
  func.func @transform_0(%arg0: i32) -> (i32, i32, i32) {
    %c0_i32 = arith.constant 0 : i32
    %c0_i32_0 = arith.constant 0 : i32
    %c0_i32_1 = arith.constant 0 : i32
    return %arg0, %c0_i32, %c0_i32_0 : i32, i32, i32
  }
  func.func @transform_1(%arg0: i32) -> (i32, i32) {
    %c0_i32 = arith.constant 0 : i32
    %c0_i32_0 = arith.constant 0 : i32
    %c0_i32_1 = arith.constant 0 : i32
    return %c0_i32, %c0_i32_0 : i32, i32
  }
  func.func @transform_2(%arg0: i32) -> (i32, i32) {
    %c0_i32 = arith.constant 0 : i32
    %c0_i32_0 = arith.constant 0 : i32
    %c0_i32_1 = arith.constant 0 : i32
    return %c0_i32, %c0_i32_0 : i32, i32
  }
  func.func @transform_3(%arg0: i32) -> (i32, i32) {
    %c0_i32 = arith.constant 0 : i32
    %c0_i32_0 = arith.constant 0 : i32
    %c0_i32_1 = arith.constant 0 : i32
    return %c0_i32, %c0_i32_0 : i32, i32
  }
  func.func @transform_4(%arg0: i32) -> (i32, i32) {
    %c0_i32 = arith.constant 0 : i32
    %c0_i32_0 = arith.constant 0 : i32
    %c0_i32_1 = arith.constant 0 : i32
    return %c0_i32, %c0_i32_0 : i32, i32
  }
  func.func @transform_5(%arg0: i32) -> (i32, i32, i32) {
    %c0_i32 = arith.constant 0 : i32
    %c0_i32_0 = arith.constant 0 : i32
    %c0_i32_1 = arith.constant 0 : i32
    return %arg0, %c0_i32, %c0_i32_0 : i32, i32, i32
  }
}

</mosaic_0001>

<bundles_post_ra>
// kernel: tpu_custom_call.1
= control target key start
LH: loop header
LB: loop body
LE: loop exit
PB: predicated region body
PF: predicated region fallthrough
CT: control target
= control target key end

     0   :  { %10 = vsyncpa [#allocation3], 0  ;;  %s510_s0 = inlined_call_operand.hbm [shape: f32[2,8,256], index: 0, kind: input, shape index: {}]   ;;  %s511_s1 = inlined_call_operand.vmem [shape: f32[8,2], index: 1, kind: input, shape index: {}]   ;;  %s512_s2 = inlined_call_operand.vmem [shape: f32[1,2], index: 2, kind: input, shape index: {}]   ;;  %s513_s3 = inlined_call_operand.vmem [shape: f32[2,32], index: 3, kind: input, shape index: {}]   ;;  %s514_s4 = inlined_call_operand.vmem [shape: f32[1,32], index: 4, kind: input, shape index: {}]   ;;  %s515_s5 = inlined_call_operand.hbm [shape: f32[2,8,256], index: 5, kind: output, shape index: {}]  }
   0x1   :  { %11 = vsyncpa [#allocation4], 0  ;;  %s412_s18 = smov [#allocation2]   ;;  %s364_s22 = scalar_lea.hbm %s510_s0, 512 }
   0x2   :  { %s17_s19 = sshll.u32 %s412_s18, 4  ;;  %p365_p0 = scmp.ne.s32.totalorder %s510_s0, %s364_s22  ;;  %s18_s19 = int_to_ptr.vmem [resolvable:$true] %s17_s19 }
   0x3   :  { %p368_p1 = scmp.lt.u32.totalorder %s364_s22, %s510_s0 }
   0x5   :  { %p370_p2 = pnand %p368_p1, %p365_p0 }
   0x7   :  { %373 = shalt.err (!%p370_p2)
}
   0x8   :  { %s374_s27 = scalar_lea.vmem %s18_s19, 512  ;;  %p379_p4 = scmp.lt.s32.totalorder %s18_s19, %s18_s19 }
   0x9   :  { %p375_p3 = scmp.ne.s32.totalorder %s18_s19, %s374_s27  ;;  %p380_p5 = scmp.lt.s32.totalorder %s374_s27, %s374_s27 }
   0xb   :  { %p381_p6 = por %p380_p5, %p379_p4 }
   0xd   :  { %p382_p7 = pnand %p381_p6, %p375_p3 }
   0xf   :  { %385 = shalt.err (!%p382_p7)
}
  0x10   :  { %s413_s28 = smov 256   ;;  %s414_s29 = smov 16  }
  0x11   :  { %23 = dma.hbm_to_vmem [thread:$0]  %s510_s0, 512, %s18_s19, [#allocation3], %s413_s28, %s413_s28, %s414_s29  }
  0x12   :  { %408 = dma.done.wait [#allocation3], 512  }
  0x13   :  { %409 = vsyncadd [#allocation3], 4294966784  ;;  %v463_v0 = vld [vmem:[#allocation2] sm:$0xff]  ;;  %v465_v1 = vld [vmem:[#allocation2 + $0x8] sm:$0xff]  ;;  %v415_v7 = vmov 0.0   ;;  %vm416_vm0 = vmmov 0   ;;  %v57_v8 = vlaneseq }
  0x14   :  { %v467_v2 = vld [vmem:[#allocation2 + $0x10] sm:$0xff]  ;;  %v39_v3 = vadd.f32 %v465_v1, %v463_v0  ;;  %v471_v4 = vld [vmem:[#allocation2 + $0x18] sm:$0xff]  ;;  %v47_v6 = vld [vmem:[%s511_s1] sm:$0xff]  ;;  %344 = vmatprep.subr.mxu0 %v415_v7  ;;  %346 = vmatprep.mubr.msk.f32.mxu0 %vm416_vm0, %v415_v7  ;;  %vm67_vm1 = vcmask 1041409   ;;  %vm69_vm2 = vcmask 64512   ;;  %vm155_vm3 = vcmask 1041408  }
  0x15   :  { %v42_v5 = vadd.f32 %v471_v4, %v467_v2  ;;  %345 = vmatpush3.msra.mxu0 %v47_v6  ;;  %349 = vmatprep.subr.mxu1 %v415_v7  ;;  %v58_v9 = vand.u32 127, %v57_v8  ;;  %v60_v10 = vshrl.u32 %v57_v8, 7  ;;  %v143_v19 = vld [vmem:[%s513_s3] sm:$0x3]  ;;  %vm151_vm4 = vcmask 15360  }
  0x16   :  { %40 = vadd.xlane.f32.xlu0 %v39_v3  ;;  %351 = vmatprep.mubr.msk.f32.mxu1 %vm416_vm0, %v415_v7  ;;  %v334_v20 = vld [vmem:[%s512_s2] ss:$0 sm:$0xff]  ;;  %s417_s2 = smov [#allocation5]  }
  0x17   :  { %v61_v12 = vsub.s32 %v58_v9, %v60_v10  ;;  %350 = vmatpush3.msk.msra.mxu1 %vm155_vm3, %v143_v19  ;;  %v336_v25 = vld [vmem:[%s514_s4] ss:$0 sm:$0xff]  ;;  %v239_v32 = vsub.s32 0, %v60_v10  ;;  %v246_v37 = vsub.s32 1, %v60_v10  ;;  %s322_s3 = sshll.u32 %s417_s2, 4  ;;  %s323_s3 = int_to_ptr.vmem [resolvable:$true] %s322_s3 }
  0x18   :  { %s386_s4 = scalar_lea.vmem %s323_s3, 512  ;;  %p391_p9 = scmp.lt.s32.totalorder %s323_s3, %s323_s3 }
  0x19   :  { %p387_p8 = scmp.ne.s32.totalorder %s323_s3, %s386_s4  ;;  %p392_p10 = scmp.lt.s32.totalorder %s386_s4, %s386_s4 }
  0x1a   :  { %43 = vadd.xlane.f32.xlu0 %v42_v5 }
  0x1b   :  { %p393_p11 = por %p392_p10, %p391_p9 }
  0x1d   :  { %p394_p12 = pnand %p393_p11, %p387_p8 }
  0xa3   :  { %v41_v11 = vpop.xlane.xlu0 %40 }
  0xa4   :  { %v45_v13 = vmul.f32 0.00390625, %v41_v11 }
  0xa6   :  { %v62_v16 = vrot.slane %v45_v13, %v61_v12 }
  0xa7   :  { %v44_v14 = vpop.xlane.xlu0 %43 }
  0xa8   :  { %v46_v15 = vmul.f32 0.00390625, %v44_v14 }
  0xaa   :  { %v66_v17 = vrot.slane %v46_v15, %v61_v12 }
  0xac   :  { %v68_v18 = vsel %vm67_vm1, %v66_v17, %v62_v16 }
  0xad   :  { %347 = vmatmul.mubr.msk.f32.vlgmr.msra.gmra.mrb[0].mxu0 %vm69_vm2, %v68_v18 }
 0x180   :  { %v138_v21 = vpop.f32.mrb[0].mxu0 }
 0x181   :  { %v139_v22 = vadd.f32 %v334_v20, %v138_v21  ;;  %v348_v23 = vpop.f32.mrb[1].mxu0 }
 0x183   :  { %v142_v24 = vmax.f32 %v139_v22, 0.0 }
 0x185   :  { %352 = vmatmul.mubr.msk.f32.vlgmr.msra.gmra.mrb[0].mxu1 %vm151_vm4, %v142_v24 }
 0x258   :  { %v225_v26 = vpop.f32.mrb[0].mxu1 }
 0x259   :  { %v226_v27 = vadd.f32 %v336_v25, %v225_v26  ;;  %v353_v28 = vpop.f32.mrb[1].mxu1 }
 0x25b   :  { %v339_v29 = vmul.f32 -1.442695, %v226_v27 }
 0x25d   :  { %360 = vpow2.f32 %v339_v29 }
 0x267   :  { %v361_v30 = vpop.eup %360 }
 0x268   :  { %v232_v31 = vadd.f32 1.0, %v361_v30 }
 0x26a   :  { %362 = vrcp.f32 %v232_v31 }
 0x274   :  { %v363_v33 = vpop.eup %362 }
 0x275   :  { %v235_v34 = vmul.f32 2.0, %v363_v33  ;;  %v268_v40 = vadd.f32 -0.5, %v363_v33 }
 0x277   :  { %v240_v35 = vrot.slane %v235_v34, %v239_v32  ;;  %v251_v36 = vadd.f32 -1.0, %v235_v34  ;;  %v247_v39 = vrot.slane %v235_v34, %v246_v37  ;;  %v272_v41 = vrot.slane %v268_v40, %v239_v32 }
 0x278   :  { %v280_v42 = vrot.slane %v268_v40, %v246_v37 }
 0x279   :  { %242 = vbcast.lane.b32.xlu1 %v240_v35, 256  ;;  %v255_v38 = vrot.slane %v251_v36, %v239_v32  ;;  %v263_v43 = vrot.slane %v251_v36, %v246_v37 }
 0x27b   :  { %258 = vbcast.lane.b32.xlu0 %v255_v38, 264 }
 0x27d   :  { %249 = vbcast.lane.b32.xlu1 %v247_v39, 256 }
 0x281   :  { %275 = vbcast.lane.b32.xlu1 %v272_v41, 272 }
 0x285   :  { %283 = vbcast.lane.b32.xlu1 %v280_v42, 272 }
 0x289   :  { %287 = vbcast.lane.b32.xlu1 %v272_v41, 280 }
 0x28d   :  { %266 = vbcast.lane.b32.xlu1 %v263_v43, 264 }
 0x291   :  { %291 = vbcast.lane.b32.xlu1 %v280_v42, 280 }
 0x2eb   :  { %v243_v44 = vpop.permute.xlu1 %242 }
 0x2ec   :  { %v293_v49 = vmul.f32 %v243_v44, %v463_v0  ;;  %v294_v50 = vmul.f32 %v243_v44, %v465_v1 }
 0x2ed   :  { %v259_v47 = vpop.permute.xlu0 %258 }
 0x2ee   :  { %v301_v51 = vmul.f32 %v259_v47, %v463_v0  ;;  %v302_v52 = vmul.f32 %v259_v47, %v465_v1 }
 0x2ef   :  { %v250_v45 = vpop.permute.xlu1 %249 }
 0x2f0   :  { %v295_v61 = vmul.f32 %v250_v45, %v467_v2  ;;  %v296_v62 = vmul.f32 %v250_v45, %v471_v4 }
 0x2f3   :  { %v276_v46 = vpop.permute.xlu1 %275 }
 0x2f4   :  { %v297_v54 = vadd.f32 %v293_v49, %v276_v46  ;;  %v298_v55 = vadd.f32 %v294_v50, %v276_v46 }
 0x2f7   :  { %v284_v48 = vpop.permute.xlu1 %283 }
 0x2f8   :  { %v299_v1 = vadd.f32 %v295_v61, %v284_v48  ;;  %v300_v5 = vadd.f32 %v296_v62, %v284_v48 }
 0x2fb   :  { %v288_v53 = vpop.permute.xlu1 %287 }
 0x2fc   :  { %v305_v56 = vadd.f32 %v301_v51, %v288_v53  ;;  %v306_v57 = vadd.f32 %v302_v52, %v288_v53 }
 0x2fe   :  { %v309_v58 = vmax.f32 %v297_v54, %v305_v56  ;;  %v310_v59 = vmax.f32 %v298_v55, %v306_v57 }
 0x2ff   :  { %v267_v60 = vpop.permute.xlu1 %266 }
 0x300   :  { %313 = vst [vmem:[#allocation5] sm:$0xff] %v309_v58  ;;  %314 = vst [vmem:[#allocation5 + $0x8] sm:$0xff] %v310_v59  ;;  %v303_v63 = vmul.f32 %v267_v60, %v467_v2  ;;  %v304_v0 = vmul.f32 %v267_v60, %v471_v4 }
 0x303   :  { %v292_v3 = vpop.permute.xlu1 %291 }
 0x304   :  { %v307_v6 = vadd.f32 %v303_v63, %v292_v3  ;;  %v308_v7 = vadd.f32 %v304_v0, %v292_v3 }
 0x306   :  { %v311_v8 = vmax.f32 %v299_v1, %v307_v6  ;;  %v312_v9 = vmax.f32 %v300_v5, %v308_v7 }
 0x308   :  { %315 = vst [vmem:[#allocation5 + $0x10] sm:$0xff] %v311_v8  ;;  %316 = vst [vmem:[#allocation5 + $0x18] sm:$0xff] %v312_v9 }
 0x309   :  { %397 = shalt.err (!%p394_p12)
}
 0x30a   :  { %s398_s15 = scalar_lea.hbm %s515_s5, 512 }
 0x30b   :  { %p399_p13 = scmp.ne.s32.totalorder %s515_s5, %s398_s15  ;;  %p402_p0 = scmp.lt.u32.totalorder %s398_s15, %s515_s5 }
 0x30d   :  { %p404_p1 = pnand %p402_p0, %p399_p13 }
 0x30f   :  { %407 = shalt.err (!%p404_p1)
}
 0x310   :  { %328 = dma.vmem_to_hbm [thread:$0]  %s323_s3, 512, %s515_s5, [#allocation4], %s413_s28, %s413_s28, %s414_s29  }
 0x311   :  { %410 = dma.done.wait [#allocation4], 512  }
 0x312   :  { %411 = vsyncadd [#allocation4], 4294966784 }
 0x313   :  { %332 = vsyncpa [#allocation3], 1 }
 0x314   :  { %333 = vsyncpa [#allocation4], 1 }

</bundles_post_ra>
